<compile_context>
chip_gen: v5e
topology: v5e:2x2
jax: 0.10.0
libtpu: 0.0.40
codegen_flags: <defaults>
</compile_context>

<pallas_src>
import functools

import jax
import jax.numpy as jnp
import numpy as np
from jax import lax
from jax.experimental import pallas as pl
from jax.experimental.pallas import tpu as pltpu


# --------------------------------------------------------------------------
# Static (trace-time Python int) helpers.
# --------------------------------------------------------------------------
def _round_up(x, m):
    return -(-x // m) * m


def _cdiv(a, b):
    return -(-a // b)


def _vmem_budget_bytes():
    """(block working-set budget, vmem_limit_bytes) for the local TPU generation."""
    cap = 64 << 20                      # conservative fallback (v7x per-TC VMEM)
    try:
        cap = int(pltpu.get_tpu_info().vmem_capacity_bytes)
    except Exception:                   # query unavailable -> keep the safe default
        pass
    vmem_limit = min((cap * 3) // 4, 100 << 20)   # ~48 MiB on v7x, 96 MiB on v5e/v6e
    return vmem_limit - (4 << 20), vmem_limit


def _plan_tiling(n, m, d_pad, in_itemsize, out_itemsize):
    """Pick (tm, tn, vmem_limit) so Y is fetched from HBM as few times as possible."""
    base_m = 8 if in_itemsize >= 4 else 16        # bf16 packs 16 rows per vreg sublane
    m_full = _round_up(max(m, 1), 128)
    n_full = _round_up(max(n, 1), base_m)
    budget, vmem_limit = _vmem_budget_bytes()

    def max_tm(tn):
        # Double-buffered X tile + Y tile + out tile must fit the budget.
        avail = budget // 2 - tn * d_pad * in_itemsize
        denom = d_pad * in_itemsize + tn * out_itemsize
        if avail < denom * base_m:
            return 0
        return min((avail // denom) // base_m * base_m, 2048)

    # Preferred: whole (padded) Y resident in VMEM -> fetched exactly once.
    tn = m_full
    tm = min(max_tm(tn), n_full)
    if tm < min(n_full, 256):
        # Y too big to keep resident next to a decent X tile: tile Y too, and make
        # the X tile as tall as possible (Y re-reads scale as n/tm).
        tn = min(512, m_full)
        tm = min(max_tm(tn), n_full)
        while tm < min(n_full, 256) and tn > 128:
            tn //= 2
            tm = min(max_tm(tn), n_full)
        tm = max(tm, base_m)
        # TODO(synk): for huge D a K-reduction grid axis + f32 VMEM accumulator would
        # keep tiles large; typical D here (MNIST <= 784) never needs it.

    # v7x has 2 TensorCores per chip: a 1x1 grid would leave one idle.
    if _cdiv(n, tm) == 1 and _cdiv(m, tn) == 1 and n > base_m:
        tm = _round_up(_cdiv(n, 2), base_m)

    return tm, tn, vmem_limit


# --------------------------------------------------------------------------
# Kernel bodies.
# --------------------------------------------------------------------------
def _tile_dnorm2(x_ref, y_ref):
    """Squared pairwise distances for one (tm, d) x (tn, d) tile pair, f32."""
    x = x_ref[...]
    y = y_ref[...]
    # MXU: contract the feature dim directly (no transpose), f32 accumulation.
    xy = lax.dot_general(x, y, dimension_numbers=(((1,), (1,)), ((), ())),
                         preferred_element_type=jnp.float32)
    # Row norms in f32; VPU/XLU work ~ 1/tn of the matmul -> negligible.
    xf = x.astype(jnp.float32)
    yf = y.astype(jnp.float32)
    xx = jnp.sum(xf * xf, axis=-1, keepdims=True)        # (tm, 1)
    yy = jnp.sum(yf * yf, axis=-1)[None, :]              # (1, tn)
    # NOTE: like the PyTorch module, no clamping of tiny negative values coming
    # from floating-point cancellation.
    return xx + yy - 2.0 * xy


def _dnorm2_kernel(x_ref, y_ref, out_ref):
    out_ref[...] = _tile_dnorm2(x_ref, y_ref)


def _rbf_fused_kernel(gamma_ref, x_ref, y_ref, out_ref):
    gamma = gamma_ref[0]
    out_ref[...] = jnp.exp(-gamma * _tile_dnorm2(x_ref, y_ref)).astype(out_ref.dtype)


# --------------------------------------------------------------------------
# pallas_call wrapper shared by both kernels.
# --------------------------------------------------------------------------
def _call_rbf(kernel, x_pad, y_pad, tm, tn, vmem_limit, out_dtype,
              gamma=None, transcendentals=0):
    n_pad, d_pad = x_pad.shape
    m_pad = y_pad.shape[0]
    gi, gj = n_pad // tm, m_pad // tn

    in_specs = [
        pl.BlockSpec((tm, d_pad), lambda i, j: (i, 0)),   # X tile: constant across j
        pl.BlockSpec((tn, d_pad), lambda i, j: (j, 0)),   # Y tile: fetched once if gj==1
    ]
    args = [x_pad, y_pad]
    if gamma is not None:
        in_specs.insert(0, pl.BlockSpec(memory_space=pltpu.MemorySpace.SMEM))
        args.insert(0, jnp.reshape(jnp.asarray(gamma, jnp.float32), (1,)))

    isz = jnp.dtype(x_pad.dtype).itemsize
    osz = jnp.dtype(out_dtype).itemsize
    y_reads = 1 if gj == 1 else gi                        # actual Y HBM traffic
    cost = pl.CostEstimate(
        flops=2 * n_pad * m_pad * d_pad + 3 * n_pad * m_pad
              + 2 * gi * gj * (tm + tn) * d_pad,
        transcendentals=transcendentals,
        bytes_accessed=(n_pad * d_pad * isz
                        + y_reads * m_pad * d_pad * isz
                        + n_pad * m_pad * osz))

    return pl.pallas_call(
        kernel,
        out_shape=jax.ShapeDtypeStruct((n_pad, m_pad), out_dtype),
        grid=(gi, gj),
        in_specs=in_specs,
        out_specs=pl.BlockSpec((tm, tn), lambda i, j: (i, j)),
        compiler_params=pltpu.CompilerParams(
            dimension_semantics=("parallel", "parallel"),
            vmem_limit_bytes=vmem_limit),
        cost_estimate=cost,
    )(*args)


# --------------------------------------------------------------------------
# Wrapper reproducing RBF.forward(X, Y).
# --------------------------------------------------------------------------
@functools.partial(jax.jit, static_argnames=("sigma", "compute_dtype"))
def rbf_forward(x, y, sigma=None, compute_dtype=None):
    """K(X, Y) = exp(-gamma * ||x_i - y_j||^2); gamma from `sigma` or median heuristic."""
    n, d = x.shape
    m, d2 = y.shape
    assert d == d2, "feature dims must match"
    out_dtype = x.dtype
    cdt = jnp.dtype(x.dtype if compute_dtype is None else compute_dtype)

    d_pad = _round_up(d, 128)
    tm, tn, vmem_limit = _plan_tiling(n, m, d_pad, cdt.itemsize, 4)
    n_pad = _cdiv(n, tm) * tm
    m_pad = _cdiv(m, tn) * tn

    # Zero padding: padded feature columns / sample rows contribute nothing to the
    # dot products or squared norms; padded output rows/cols are sliced away below.
    x_pad = jnp.pad(x.astype(cdt), ((0, n_pad - n), (0, d_pad - d)))
    y_pad = jnp.pad(y.astype(cdt), ((0, m_pad - m), (0, d_pad - d)))

    if sigma is None:
        # Median-bandwidth path: materialize dnorm2 once (Pallas), take the LOWER
        # median (matches torch.median), then apply exp as a cheap elementwise pass
        # over the already-materialized matrix -- no second matmul / Y re-stream.
        dnorm2 = _call_rbf(_dnorm2_kernel, x_pad, y_pad, tm, tn, vmem_limit,
                           jnp.float32)[:n, :m]
        flat = dnorm2.reshape(-1)
        k = (n * m - 1) // 2
        # TODO(synk): median selection has no clean Pallas TPU equivalent; plain-XLA glue.
        med = jnp.partition(flat, k)[k]
        h = med / (2.0 * np.log(n + 1))
        gamma = 1.0 / (1e-08 + 2.0 * h)            # sigma = sqrt(h)  =>  2*sigma^2 = 2*h
        return jnp.exp(-gamma * dnorm2).astype(out_dtype)

    gamma = 1.0 / (1e-08 + 2.0 * float(sigma) ** 2)
    k_pad = _call_rbf(_rbf_fused_kernel, x_pad, y_pad, tm, tn, vmem_limit, out_dtype,
                      gamma=gamma, transcendentals=n_pad * m_pad)
    return k_pad[:n, :m]


# Pure-JAX reference for correctness checks.
def rbf_forward_ref(x, y, sigma=None):
    n = x.shape[0]
    x32 = x.astype(jnp.float32)
    y32 = y.astype(jnp.float32)
    xy = jnp.dot(x32, y32.T, precision=lax.Precision.HIGHEST)
    dnorm2 = (-2.0 * xy + jnp.sum(x32 * x32, -1, keepdims=True)
              + jnp.sum(y32 * y32, -1)[None, :])
    if sigma is None:
        flat = dnorm2.reshape(-1)
        med = jnp.sort(flat)[(flat.shape[0] - 1) // 2]   # lower median, as torch.median
        h = med / (2.0 * np.log(n + 1))
        gamma = 1.0 / (1e-08 + 2.0 * h)
    else:
        gamma = 1.0 / (1e-08 + 2.0 * float(sigma) ** 2)
    return jnp.exp(-gamma * dnorm2)


if __name__ == "__main__":
    key = jax.random.PRNGKey(0)
    kx, ky = jax.random.split(key)

    # Small shapes consistent with the module's generic (N, D) x (M, D) particle sets.
    N, M, D = 64, 48, 32
    X = jax.random.normal(kx, (N, D), dtype=jnp.float32)
    Y = jax.random.normal(ky, (M, D), dtype=jnp.float32)

    # 1) Median-bandwidth path (module default, sigma=None).
    K = jax.block_until_ready(rbf_forward(X, Y))
    np.testing.assert_allclose(np.asarray(K), np.asarray(rbf_forward_ref(X, Y)),
                               rtol=1e-4, atol=2e-4)

    # 2) Fixed-sigma path (single fully fused Pallas kernel).
    K2 = jax.block_until_ready(rbf_forward(X, Y, sigma=1.5))
    np.testing.assert_allclose(np.asarray(K2),
                               np.asarray(rbf_forward_ref(X, Y, sigma=1.5)),
                               rtol=1e-4, atol=2e-4)

    # 3) bf16-MXU fast path; compare against the reference on bf16-rounded inputs so
    #    the remaining difference is accumulation order only.
    Xb = X.astype(jnp.bfloat16).astype(jnp.float32)
    Yb = Y.astype(jnp.bfloat16).astype(jnp.float32)
    K3 = jax.block_until_ready(rbf_forward(X, Y, sigma=1.5, compute_dtype=jnp.bfloat16))
    np.testing.assert_allclose(np.asarray(K3),
                               np.asarray(rbf_forward_ref(Xb, Yb, sigma=1.5)),
                               rtol=1e-3, atol=1e-3)

    # 4) Non-aligned, multi-tile shapes exercising the padded / tiled (i, j) grid.
    N2, M2, D2 = 640, 260, 48
    kx2, ky2 = jax.random.split(jax.random.PRNGKey(1))
    X2 = jax.random.normal(kx2, (N2, D2), dtype=jnp.float32)
    Y2 = jax.random.normal(ky2, (M2, D2), dtype=jnp.float32)
    K4 = jax.block_until_ready(rbf_forward(X2, Y2))
    np.testing.assert_allclose(np.asarray(K4), np.asarray(rbf_forward_ref(X2, Y2)),
                               rtol=1e-4, atol=2e-4)
    K5 = jax.block_until_ready(rbf_forward(X2, Y2, sigma=0.7))
    np.testing.assert_allclose(np.asarray(K5),
                               np.asarray(rbf_forward_ref(X2, Y2, sigma=0.7)),
                               rtol=1e-4, atol=2e-4)

    print("KERNEL_OK")
</pallas_src>

<mosaic_0001>
module attributes {stable_mosaic.version = 11 : i64} {
  func.func @_dnorm2_kernel(%arg0: i32, %arg1: i32, %arg2: memref<32x128xf32, #tpu.memory_space<vmem>>, %arg3: memref<128x128xf32, #tpu.memory_space<vmem>>, %arg4: memref<32x128xf32, #tpu.memory_space<vmem>>) attributes {dimension_semantics = [#tpu.dimension_semantics<parallel>, #tpu.dimension_semantics<parallel>], iteration_bounds = array<i64: 2, 1>, scalar_prefetch = 0 : i64, scratch_operands = 0 : i64, tpu.core_type = #tpu.core_type<tc>, window_params = [{transform_indices = @transform_0, window_bounds = array<i64: 32, 128>}, {transform_indices = @transform_1, window_bounds = array<i64: 128, 128>}, {transform_indices = @transform_2, window_bounds = array<i64: 32, 128>}]} {
    %c0 = arith.constant 0 : index
    %c0_0 = arith.constant 0 : index
    %0 = vector.load %arg2[%c0, %c0_0] : memref<32x128xf32, #tpu.memory_space<vmem>>, vector<32x128xf32>
    %c0_1 = arith.constant 0 : index
    %c0_2 = arith.constant 0 : index
    %1 = vector.load %arg3[%c0_1, %c0_2] : memref<128x128xf32, #tpu.memory_space<vmem>>, vector<128x128xf32>
    %cst = arith.constant dense<0.000000e+00> : vector<32x128xf32>
    %2 = tpu.matmul %0, %1, %cst {dimension_numbers = #tpu.dot_dimension_numbers<[1], [1], [0], [0], [0, 0, 1, 0], [], []>} : vector<32x128xf32>, vector<128x128xf32>, vector<32x128xf32> -> vector<32x128xf32>
    %3 = arith.mulf %0, %0 : vector<32x128xf32>
    %cst_3 = arith.constant dense<0.000000e+00> : vector<32xf32>
    %4 = vector.multi_reduction <add>, %3, %cst_3 [1] : vector<32x128xf32> to vector<32xf32>
    %5 = vector.shape_cast %4 : vector<32xf32> to vector<32x1xf32>
    %6 = arith.mulf %1, %1 : vector<128x128xf32>
    %cst_4 = arith.constant dense<0.000000e+00> : vector<128xf32>
    %7 = vector.multi_reduction <add>, %6, %cst_4 [1] : vector<128x128xf32> to vector<128xf32>
    %8 = vector.shape_cast %7 : vector<128xf32> to vector<1x128xf32>
    %9 = vector.broadcast %5 : vector<32x1xf32> to vector<32x128xf32>
    %10 = vector.broadcast %8 : vector<1x128xf32> to vector<32x128xf32>
    %11 = arith.addf %9, %10 : vector<32x128xf32>
    %cst_5 = arith.constant 2.000000e+00 : f32
    %12 = vector.broadcast %cst_5 : f32 to vector<32x128xf32>
    %13 = arith.mulf %12, %2 : vector<32x128xf32>
    %14 = arith.subf %11, %13 : vector<32x128xf32>
    %c0_6 = arith.constant 0 : index
    %c0_7 = arith.constant 0 : index
    %15 = vector.load %arg4[%c0_6, %c0_7] : memref<32x128xf32, #tpu.memory_space<vmem>>, vector<32x128xf32>
    tpu.vector_store %arg4[%c0_6, %c0_7], %14 {strides = array<i32>} : memref<32x128xf32, #tpu.memory_space<vmem>>, vector<32x128xf32>,
    return
  }
  func.func @transform_0(%arg0: i32, %arg1: i32) -> (i32, i32) {
    %c0_i32 = arith.constant 0 : i32
    %c0_i32_0 = arith.constant 0 : i32
    return %arg0, %c0_i32 : i32, i32
  }
  func.func @transform_1(%arg0: i32, %arg1: i32) -> (i32, i32) {
    %c0_i32 = arith.constant 0 : i32
    %c0_i32_0 = arith.constant 0 : i32
    return %arg1, %c0_i32 : i32, i32
  }
  func.func @transform_2(%arg0: i32, %arg1: i32) -> (i32, i32) {
    %c0_i32 = arith.constant 0 : i32
    return %arg0, %arg1 : i32, i32
  }
}

</mosaic_0001>

<bundles_post_ra>
// kernel: rbf_forward.1
= control target key start
LH: loop header
LB: loop body
LE: loop exit
PB: predicated region body
PF: predicated region fallthrough
CT: control target
= control target key end

     0   :  { %s619_s9 = smov 0   ;;  %s621_s10 = smov 0   ;;  %s792_s0 = inlined_call_operand.vmem [shape: f32[64,128], index: 0, kind: input, shape index: {}]   ;;  %s793_s1 = inlined_call_operand.vmem [shape: f32[128,128], index: 1, kind: input, shape index: {}]   ;;  %s794_s2 = inlined_call_operand.vmem [shape: f32[64,128], index: 2, kind: output, shape index: {}]  }
   0x1   :  { %s623_s11 = smov 0  }
   0x2 LB: > { %s24_s12 = sadd.s32 1, %s598_s10  ;;  %p501_p0 = scmp.ge.s32.totalorder %s602_s11, 1  ;;  %s602_s11 = sphi %s623_s11, %s12_s11   ;;  %s598_s10 = sphi %s621_s10, %s796_s10   ;;  %s594_s9 = sphi %s619_s9, %s795_s9  }
   0x3   : > { %p26_p1 = scmp.ge.s32.totalorder %s24_s12, 2  ;;  %p138_p2 = scmp.lt.s32.totalorder %s602_s11, 3 }
   0x5   : > { %s798_s12 = smov (%p26_p1, %s24_s12), 0  ;;  %p139_p3 = pnand %p501_p0, %p138_p2 }
   0x6   : > { %s502_s19 = sshll.u32 (!%p139_p3), %s594_s9, 2 }
   0x7   : > { %142 = sbr.rel (%p139_p3) target bundleno = 215 (0xd7), region = 28  ;;  %p169_p4 = scmp.lt.s32.totalorder (!%p139_p3), %s502_s19, 7 }
   0xc   : > { %v642_v0 = vld [vmem:[%s793_s1 + $0x78] sm:$0xff]  ;;  %v647_v1 = vld [vmem:[%s793_s1 + $0x10] sm:$0xff]  ;;  %v652_v2 = vld [vmem:[%s793_s1] sm:$0xff]  ;;  %s800_s19 = smov (!%p169_p4, %s502_s19), 7  ;;  %v314_v40 = vlaneseq  ;;  %vm319_vm0 = vcmask 130112   ;;  %vm323_vm1 = vcmask 195712  }
   0xd   : > { %209 = vmatpush.xpose.msra.mxu0 %v642_v0  ;;  %508 = vmatpush.xpose.msra.mxu1 %v642_v0  ;;  %v252_v3 = vmul.f32 %v647_v1, %v647_v1  ;;  %v250_v4 = vmul.f32 %v652_v2, %v652_v2  ;;  %v663_v5 = vld [vmem:[%s793_s1 + $0x20] sm:$0xff]  ;;  %v670_v6 = vld [vmem:[%s793_s1 + $0x70] sm:$0xff]  ;;  %v677_v8 = vld [vmem:[%s793_s1 + $0x18] sm:$0xff]  ;;  %s503_s9 = sshll.u32 %s800_s19, 3  ;;  %v265_v33 = vmul.f32 %v642_v0, %v642_v0  ;;  %vm327_vm2 = vcmask 261312  }
   0xe   : > { %509 = vmatpush.xpose.msra.mxu2 %v642_v0  ;;  %510 = vmatpush.xpose.msra.mxu3 %v642_v0  ;;  %v254_v7 = vmul.f32 %v663_v5, %v663_v5  ;;  %v682_v9 = vld [vmem:[%s793_s1 + $0x8] sm:$0xff]  ;;  %v253_v12 = vmul.f32 %v677_v8, %v677_v8  ;;  %v205_v15 = vld [vmem:[%s793_s1 + $0x60] sm:$0xff]  ;;  %v200_v16 = vld [vmem:[%s793_s1 + $0x38] sm:$0xff]  ;;  %v264_v30 = vmul.f32 %v670_v6, %v670_v6  ;;  %s172_s24 = scalar_lea.vmem %s792_s0, %s503_s9  ;;  %v760_v42 = vand.u32 127, %v314_v40  ;;  %s187_s27 = scalar_lea.vmem %s794_s2, %s503_s9 }
   0xf   : > { %270 = vadd.xlane.f32.xlu1 %v252_v3  ;;  %266 = vadd.xlane.f32.xlu0 %v250_v4  ;;  %v689_v10 = vld [vmem:[%s793_s1 + $0x28] sm:$0xff]  ;;  %v251_v13 = vmul.f32 %v682_v9, %v682_v9  ;;  %v199_v17 = vld [vmem:[%s793_s1 + $0x30] sm:$0xff]  ;;  %v201_v18 = vld [vmem:[%s793_s1 + $0x40] sm:$0xff]  ;;  %v257_v20 = vmul.f32 %v200_v16, %v200_v16  ;;  %v262_v29 = vmul.f32 %v205_v15, %v205_v15  ;;  %vm331_vm3 = vcmask 326912  }
  0x10   : > { %274 = vadd.xlane.f32.xlu2 %v254_v7  ;;  %v206_v11 = vld [vmem:[%s793_s1 + $0x68] sm:$0xff]  ;;  %v255_v14 = vmul.f32 %v689_v10, %v689_v10  ;;  %v204_v19 = vld [vmem:[%s793_s1 + $0x58] sm:$0xff]  ;;  %v256_v21 = vmul.f32 %v199_v17, %v199_v17  ;;  %v258_v22 = vmul.f32 %v201_v18, %v201_v18  ;;  %v203_v23 = vld [vmem:[%s793_s1 + $0x50] sm:$0xff]  ;;  %v317_v45 = vadd.s32 4294967288, %v760_v42 }
  0x11   : > { %210 = vmatpush.xpose.msra.mxu0 %v670_v6  ;;  %511 = vmatpush.xpose.msra.mxu1 %v670_v6  ;;  %v202_v24 = vld [vmem:[%s793_s1 + $0x48] sm:$0xff]  ;;  %v260_v25 = vmul.f32 %v203_v23, %v203_v23  ;;  %v261_v27 = vmul.f32 %v204_v19, %v204_v19  ;;  %v263_v28 = vmul.f32 %v206_v11, %v206_v11  ;;  %v189_v31 = vld [vmem:[%s172_s24] sm:$0xff]  ;;  %v191_v36 = vld [vmem:[%s172_s24 + $0x10] sm:$0xff]  ;;  %v321_v46 = vadd.s32 4294967280, %v760_v42 }
  0x12   : > { %512 = vmatpush.xpose.msra.mxu2 %v670_v6  ;;  %513 = vmatpush.xpose.msra.mxu3 %v670_v6  ;;  %v259_v26 = vmul.f32 %v202_v24, %v202_v24  ;;  %v190_v32 = vld [vmem:[%s172_s24 + $0x8] sm:$0xff]  ;;  %v238_v34 = vmul.f32 %v189_v31, %v189_v31  ;;  %v192_v37 = vld [vmem:[%s172_s24 + $0x18] sm:$0xff]  ;;  %v240_v38 = vmul.f32 %v191_v36, %v191_v36  ;;  %v325_v50 = vadd.s32 4294967272, %v760_v42 }
  0x13   : > { %v239_v35 = vmul.f32 %v190_v32, %v190_v32  ;;  %v241_v39 = vmul.f32 %v192_v37, %v192_v37  ;;  %v329_v54 = vadd.s32 4294967264, %v760_v42  ;;  %v333_v58 = vadd.s32 4294967256, %v760_v42 }
  0x14   : > { %v337_v61 = vadd.s32 4294967248, %v760_v42  ;;  %vm335_vm4 = vcmask 392512   ;;  %vm339_vm5 = vcmask 458112   ;;  %v345_v6 = vadd.s32 4294967232, %v760_v42 }
  0x15   : > { %211 = vmatpush.xpose.msra.mxu0 %v206_v11  ;;  %514 = vmatpush.xpose.msra.mxu1 %v206_v11  ;;  %vm343_vm6 = vcmask 523712   ;;  %vm347_vm7 = vcmask 589312   ;;  %vm351_vm8 = vcmask 654912   ;;  %vm355_vm9 = vcmask 720512  }
  0x16   : > { %515 = vmatpush.xpose.msra.mxu2 %v206_v11  ;;  %516 = vmatpush.xpose.msra.mxu3 %v206_v11  ;;  %vm359_vm10 = vcmask 786112   ;;  %vm363_vm11 = vcmask 851712   ;;  %vm367_vm12 = vcmask 917312   ;;  %vm371_vm13 = vcmask 982912  }
  0x17   : > { %272 = vadd.xlane.f32.xlu1 %v253_v12  ;;  %268 = vadd.xlane.f32.xlu0 %v251_v13  ;;  %v353_v13 = vadd.s32 4294967216, %v760_v42  ;;  %vm375_vm14 = vcmask 1048512  }
  0x18   : > { %276 = vadd.xlane.f32.xlu2 %v255_v14 }
  0x19   : > { %212 = vmatpush.xpose.msra.mxu0 %v205_v15  ;;  %517 = vmatpush.xpose.msra.mxu1 %v205_v15 }
  0x1a   : > { %518 = vmatpush.xpose.msra.mxu2 %v205_v15  ;;  %519 = vmatpush.xpose.msra.mxu3 %v205_v15 }
  0x1d   : > { %213 = vmatpush.xpose.msra.mxu0 %v204_v19  ;;  %520 = vmatpush.xpose.msra.mxu1 %v204_v19 }
  0x1e   : > { %521 = vmatpush.xpose.msra.mxu2 %v204_v19  ;;  %522 = vmatpush.xpose.msra.mxu3 %v204_v19 }
  0x1f   : > { %280 = vadd.xlane.f32.xlu1 %v257_v20  ;;  %278 = vadd.xlane.f32.xlu0 %v256_v21  ;;  %v361_v21 = vadd.s32 4294967200, %v760_v42 }
  0x20   : > { %282 = vadd.xlane.f32.xlu2 %v258_v22 }
  0x21   : > { %214 = vmatpush.xpose.msra.mxu0 %v203_v23  ;;  %523 = vmatpush.xpose.msra.mxu1 %v203_v23 }
  0x22   : > { %524 = vmatpush.xpose.msra.mxu2 %v203_v23  ;;  %525 = vmatpush.xpose.msra.mxu3 %v203_v23 }
  0x25   : > { %215 = vmatpush.xpose.msra.mxu0 %v202_v24  ;;  %526 = vmatpush.xpose.msra.mxu1 %v202_v24 }
  0x26   : > { %527 = vmatpush.xpose.msra.mxu2 %v202_v24  ;;  %528 = vmatpush.xpose.msra.mxu3 %v202_v24 }
  0x27   : > { %286 = vadd.xlane.f32.xlu1 %v260_v25  ;;  %284 = vadd.xlane.f32.xlu0 %v259_v26  ;;  %v365_v25 = vadd.s32 4294967192, %v760_v42 }
  0x28   : > { %288 = vadd.xlane.f32.xlu2 %v261_v27 }
  0x29   : > { %216 = vmatpush.xpose.msra.mxu0 %v201_v18  ;;  %529 = vmatpush.xpose.msra.mxu1 %v201_v18 }
  0x2a   : > { %530 = vmatpush.xpose.msra.mxu2 %v201_v18  ;;  %531 = vmatpush.xpose.msra.mxu3 %v201_v18 }
  0x2d   : > { %217 = vmatpush.xpose.msra.mxu0 %v200_v16  ;;  %532 = vmatpush.xpose.msra.mxu1 %v200_v16 }
  0x2e   : > { %533 = vmatpush.xpose.msra.mxu2 %v200_v16  ;;  %534 = vmatpush.xpose.msra.mxu3 %v200_v16 }
  0x2f   : > { %292 = vadd.xlane.f32.xlu1 %v263_v28  ;;  %290 = vadd.xlane.f32.xlu0 %v262_v29  ;;  %v369_v29 = vadd.s32 4294967184, %v760_v42 }
  0x30   : > { %294 = vadd.xlane.f32.xlu2 %v264_v30 }
  0x31   : > { %218 = vmatpush.xpose.msra.mxu0 %v199_v17  ;;  %535 = vmatpush.xpose.msra.mxu1 %v199_v17 }
  0x32   : > { %536 = vmatpush.xpose.msra.mxu2 %v199_v17  ;;  %537 = vmatpush.xpose.msra.mxu3 %v199_v17  ;;  %v357_v17 = vadd.s32 4294967208, %v760_v42 }
  0x35   : > { %219 = vmatpush.xpose.msra.mxu0 %v689_v10  ;;  %538 = vmatpush.xpose.msra.mxu1 %v689_v10 }
  0x36   : > { %539 = vmatpush.xpose.msra.mxu2 %v689_v10  ;;  %540 = vmatpush.xpose.msra.mxu3 %v689_v10 }
  0x37   : > { %296 = vadd.xlane.f32.xlu0 %v265_v33  ;;  %242 = vadd.xlane.f32.xlu1 %v238_v34  ;;  %v373_v33 = vadd.s32 4294967176, %v760_v42 }
  0x38   : > { %244 = vadd.xlane.f32.xlu2 %v239_v35 }
  0x39   : > { %220 = vmatpush.xpose.msra.mxu0 %v663_v5  ;;  %541 = vmatpush.xpose.msra.mxu1 %v663_v5 }
  0x3a   : > { %542 = vmatpush.xpose.msra.mxu2 %v663_v5  ;;  %543 = vmatpush.xpose.msra.mxu3 %v663_v5 }
  0x3d   : > { %221 = vmatpush.xpose.msra.mxu0 %v677_v8  ;;  %544 = vmatpush.xpose.msra.mxu1 %v677_v8 }
  0x3e   : > { %545 = vmatpush.xpose.msra.mxu2 %v677_v8  ;;  %546 = vmatpush.xpose.msra.mxu3 %v677_v8 }
  0x3f   : > { %246 = vadd.xlane.f32.xlu0 %v240_v38  ;;  %248 = vadd.xlane.f32.xlu1 %v241_v39 }
  0x41   : > { %222 = vmatpush.xpose.msra.mxu0 %v647_v1  ;;  %547 = vmatpush.xpose.msra.mxu1 %v647_v1 }
  0x42   : > { %548 = vmatpush.xpose.msra.mxu2 %v647_v1  ;;  %549 = vmatpush.xpose.msra.mxu3 %v647_v1 }
  0x45   : > { %223 = vmatpush.xpose.msra.mxu0 %v682_v9  ;;  %550 = vmatpush.xpose.msra.mxu1 %v682_v9 }
  0x46   : > { %551 = vmatpush.xpose.msra.mxu2 %v682_v9  ;;  %552 = vmatpush.xpose.msra.mxu3 %v682_v9  ;;  %v349_v9 = vadd.s32 4294967224, %v760_v42 }
  0x49   : > { %224 = vmatpush.xpose.msra.mxu0 %v652_v2  ;;  %553 = vmatpush.xpose.msra.mxu1 %v652_v2 }
  0x4a   : > { %554 = vmatpush.xpose.msra.mxu2 %v652_v2  ;;  %555 = vmatpush.xpose.msra.mxu3 %v652_v2  ;;  %v341_v2 = vadd.s32 4294967240, %v760_v42 }
  0x4c   : > { %225 = vmatmul.f32.vlgmr.msra.gmra.mxu0 %v189_v31  ;;  %228 = vmatmul.f32.vlgmr.msra.gmra.mxu1 %v190_v32 }
  0x4d   : > { %231 = vmatmul.f32.vlgmr.msra.gmra.mxu2 %v191_v36  ;;  %234 = vmatmul.f32.vlgmr.msra.gmra.mxu3 %v192_v37 }
  0x82   : > { %v267_v41 = vpop.xlane.xlu0 %266  ;;  %v271_v43 = vpop.xlane.xlu1 %270 }
  0x83   : > { %v275_v44 = vpop.xlane.xlu2 %274  ;;  %v316_v48 = vperm.slane %v267_v41, %v760_v42  ;;  %v322_v51 = vperm.slane %v271_v43, %v321_v46 }
  0x84   : > { %v330_v59 = vperm.slane %v275_v44, %v329_v54 }
  0x8a   : > { %v269_v47 = vpop.xlane.xlu0 %268  ;;  %v273_v52 = vpop.xlane.xlu1 %272 }
  0x8b   : > { %v318_v49 = vperm.slane %v269_v47, %v317_v45  ;;  %v326_v55 = vperm.slane %v273_v52, %v325_v50  ;;  %v277_v56 = vpop.xlane.xlu2 %276 }
  0x8c   : > { %v334_v63 = vperm.slane %v277_v56, %v333_v58 }
  0x8d   : > { %v320_v53 = vsel %vm319_vm0, %v318_v49, %v316_v48 }
  0x8e   : > { %v324_v57 = vsel %vm323_vm1, %v322_v51, %v320_v53 }
  0x8f   : > { %v328_v60 = vsel %vm327_vm2, %v326_v55, %v324_v57 }
  0x90   : > { %v332_v0 = vsel %vm331_vm3, %v330_v59, %v328_v60 }
  0x91   : > { %v336_v4 = vsel %vm335_vm4, %v334_v63, %v332_v0 }
  0x92   : > { %v279_v62 = vpop.xlane.xlu0 %278  ;;  %v281_v1 = vpop.xlane.xlu1 %280 }
  0x93   : > { %v338_v3 = vperm.slane %v279_v62, %v337_v61  ;;  %v283_v5 = vpop.xlane.xlu2 %282  ;;  %v342_v7 = vperm.slane %v281_v1, %v341_v2 }
  0x94   : > { %v346_v10 = vperm.slane %v283_v5, %v345_v6 }
  0x95   : > { %v340_v8 = vsel %vm339_vm5, %v338_v3, %v336_v4 }
  0x96   : > { %v344_v12 = vsel %vm343_vm6, %v342_v7, %v340_v8 }
  0x97   : > { %v348_v16 = vsel %vm347_vm7, %v346_v10, %v344_v12 }
  0x9a   : > { %v285_v11 = vpop.xlane.xlu0 %284  ;;  %v287_v14 = vpop.xlane.xlu1 %286 }
  0x9b   : > { %v350_v15 = vperm.slane %v285_v11, %v349_v9  ;;  %v289_v18 = vpop.xlane.xlu2 %288  ;;  %v354_v19 = vperm.slane %v287_v14, %v353_v13 }
  0x9c   : > { %v358_v22 = vperm.slane %v289_v18, %v357_v17 }
  0x9d   : > { %v352_v20 = vsel %vm351_vm8, %v350_v15, %v348_v16 }
  0x9e   : > { %v356_v23 = vsel %vm355_vm9, %v354_v19, %v352_v20 }
  0x9f   : > { %v360_v28 = vsel %vm359_vm10, %v358_v22, %v356_v23 }
  0xa2   : > { %v291_v24 = vpop.xlane.xlu0 %290  ;;  %v293_v26 = vpop.xlane.xlu1 %292 }
  0xa3   : > { %v362_v27 = vperm.slane %v291_v24, %v361_v21  ;;  %v366_v30 = vperm.slane %v293_v26, %v365_v25  ;;  %v295_v31 = vpop.xlane.xlu2 %294 }
  0xa4   : > { %v370_v34 = vperm.slane %v295_v31, %v369_v29 }
  0xa5   : > { %v364_v32 = vsel %vm363_vm11, %v362_v27, %v360_v28 }
  0xa6   : > { %v368_v35 = vsel %vm367_vm12, %v366_v30, %v364_v32 }
  0xa7   : > { %v372_v38 = vsel %vm371_vm13, %v370_v34, %v368_v35 }
  0xaa   : > { %v297_v36 = vpop.xlane.xlu0 %296  ;;  %v243_v39 = vpop.xlane.xlu1 %242 }
  0xab   : > { %v374_v37 = vperm.slane %v297_v36, %v373_v33  ;;  %v245_v41 = vpop.xlane.xlu2 %244 }
  0xad   : > { %v376_v40 = vsel %vm375_vm14, %v374_v37, %v372_v38 }
  0xae   : > { %v390_v45 = vadd.f32 %v376_v40, %v243_v39  ;;  %v391_v46 = vadd.f32 %v376_v40, %v245_v41 }
  0xb2   : > { %v247_v50 = vpop.xlane.xlu0 %246  ;;  %v249_v51 = vpop.xlane.xlu1 %248 }
  0xb3   : > { %v392_v54 = vadd.f32 %v376_v40, %v247_v50  ;;  %v393_v55 = vadd.f32 %v376_v40, %v249_v51 }
  0xc9   : > { %v226_v43 = vpop.f32.mrf.mxu0  ;;  %v229_v44 = vpop.f32.mrf.mxu1 }
  0xca   : > { %v394_v47 = vmul.f32 2.0, %v226_v43  ;;  %v395_v48 = vmul.f32 2.0, %v229_v44 }
  0xcc   : > { %v398_v42 = vsub.f32 %v390_v45, %v394_v47  ;;  %v399_v49 = vsub.f32 %v391_v46, %v395_v48 }
  0xce   : > { %402 = vst [vmem:[%s187_s27] sm:$0xff] %v398_v42 }
  0xcf   : > { %403 = vst [vmem:[%s187_s27 + $0x8] sm:$0xff] %v399_v49 }
  0xd0   : > { %v232_v52 = vpop.f32.mrf.mxu2  ;;  %v235_v53 = vpop.f32.mrf.mxu3 }
  0xd1   : > { %v396_v56 = vmul.f32 2.0, %v232_v52  ;;  %v397_v57 = vmul.f32 2.0, %v235_v53 }
  0xd3   : > { %v400_v58 = vsub.f32 %v392_v54, %v396_v56  ;;  %v401_v59 = vsub.f32 %v393_v55, %v397_v57 }
  0xd5   : > { %404 = vst [vmem:[%s187_s27 + $0x10] sm:$0xff] %v400_v58 }
  0xd6   : > { %405 = vst [vmem:[%s187_s27 + $0x18] sm:$0xff] %v401_v59 }
  0xd7 PF: > { %s12_s11 = sadd.s32 1, %s602_s11   ;;  %s795_s9 = smov %s598_s10 }
  0xd8   : > { %p9_p5 = scmp.ge.s32.totalorder %s12_s11, 4   ;;  %s796_s10 = smov %s798_s12 }
  0xda   :  { %11 = sbr.rel (!%p9_p5) target bundleno = 2 (0x2), region = 61 }

</bundles_post_ra>
